<compile_context>
chip_gen: v7x
topology: tpu7x:2x2x1
jax: 0.10.0
libtpu: 0.0.40
codegen_flags: <defaults>
</compile_context>

<pallas_src>
import jax
import jax.numpy as jnp
from jax.experimental import pallas as pl
from jax.experimental.pallas import tpu as pltpu

_LANE = 128
_TARGET_BLOCK_BYTES = 4 << 20   # ~4 MiB per (input/output) block buffer
_MIN_SPLIT_BYTES = 1 << 20      # force >=2 grid steps above this (megacore utilization)


def _nlsq_kernel(params_ref, x_ref, o_ref):
    # params_ref: SMEM (5,) float32 -> [a, b, c, d, g] (already precomputed).
    a = params_ref[0]
    b = params_ref[1]
    c = params_ref[2]
    d = params_ref[3]
    g = params_ref[4]

    x = x_ref[...].astype(jnp.float32)
    t = d * x + g
    den = 1.0 + t * t                          # >= 1, never zero
    inv = pl.reciprocal(den, approx=True)      # EUP slot (keeps VALU free)
    inv = inv * (2.0 - den * inv)              # one Newton step -> ~f32 accuracy
    o_ref[...] = (a + b * x + c * inv).astype(o_ref.dtype)


def nlsq_forward(x, nlsq_params, alpha=0.95):
    """x: any-shape array (e.g. NCHW), nlsq_params: (5, 1) float32 -> same shape/dtype as x."""
    c_coeff = 8.0 * (3.0 ** 0.5) / 9.0 * alpha

    # Hoisted scalar parameter math (plain JAX on 5 elements, outside the kernel).
    p = nlsq_params.reshape(5).astype(jnp.float32)
    b = jnp.exp(p[1])
    d = jnp.exp(p[3])
    c = c_coeff * (b / d) * jnp.tanh(p[2])
    params = jnp.stack([p[0], b, c, d, p[4]])  # (5,) f32 -> SMEM via scalar prefetch

    orig_shape = x.shape
    dtype = x.dtype
    n = x.size
    itemsize = jnp.dtype(dtype).itemsize
    # Sublane packing: f32 -> 8, bf16/f16 -> 16, int8/fp8 -> 32.
    pack = max(8, 32 // max(itemsize, 1))

    flat = x.reshape(-1)  # metadata-only for contiguous arrays
    pad = (-n) % _LANE
    if pad:
        # Rare path: flat size not a multiple of 128 lanes.
        flat = jnp.pad(flat, (0, pad))
    n_pad = n + pad

    # Pick a wide lane-dense last dim that divides the flat size exactly and
    # keeps at least 8 sublane rows (full vregs); fall back to 128 for tiny inputs.
    width = _LANE
    for cand in (8192, 4096, 2048, 1024, 512, 256, 128):
        if n_pad % cand == 0 and n_pad // cand >= 8:
            width = cand
            break
    rows = n_pad // width
    x2d = flat.reshape(rows, width)

    row_bytes = width * itemsize
    target_rows = max(pack, (_TARGET_BLOCK_BYTES // row_bytes) // pack * pack)
    total_bytes = n_pad * itemsize

    if rows > target_rows:
        tm = target_rows                       # ~4 MiB blocks, pack-aligned
        grid = (pl.cdiv(rows, tm),)            # ragged last block is fine (elementwise)
    elif total_bytes > _MIN_SPLIT_BYTES and rows >= 2 * pack:
        # Mid-size input: force >=2 grid steps so both TensorCores get work (v7x).
        half = pl.cdiv(rows, 2)
        tm = ((half + pack - 1) // pack) * pack
        grid = (pl.cdiv(rows, tm),)
    else:
        tm = rows                              # full second-to-last dim (always legal)
        grid = (1,)

    out2d = pl.pallas_call(
        _nlsq_kernel,
        out_shape=jax.ShapeDtypeStruct((rows, width), dtype),
        grid_spec=pltpu.PrefetchScalarGridSpec(
            num_scalar_prefetch=1,             # params -> SMEM once, no per-step DMA
            grid=grid,
            in_specs=[pl.BlockSpec((tm, width), lambda i, params: (i, 0))],
            out_specs=pl.BlockSpec((tm, width), lambda i, params: (i, 0)),
        ),
        compiler_params=pltpu.CompilerParams(
            dimension_semantics=("parallel",),
            vmem_limit_bytes=32 << 20,         # safe on v5e (16 MiB default) and v6e/v7x
        ),
    )(params, x2d)

    out = out2d.reshape(-1)
    if pad:
        out = out[:n]
    return out.reshape(orig_shape)


def nlsq_reference(x, nlsq_params, alpha=0.95):
    c_coeff = 8.0 * (3.0 ** 0.5) / 9.0 * alpha
    p = nlsq_params.reshape(5).astype(jnp.float32)
    b = jnp.exp(p[1])
    d = jnp.exp(p[3])
    c = c_coeff * (b / d) * jnp.tanh(p[2])
    return (p[0] + b * x + c / (1.0 + (d * x + p[4]) ** 2)).astype(x.dtype)


if __name__ == "__main__":
    key = jax.random.PRNGKey(0)
    k_x, k_p = jax.random.split(key)

    # Deterministic xavier_normal-style init for (5, 1): std = sqrt(2 / (fan_in + fan_out))
    std = (2.0 / (1 + 5)) ** 0.5
    nlsq_params = std * jax.random.normal(k_p, (5, 1), dtype=jnp.float32)

    # Primary small NCHW test (module-consistent shape).
    x = jax.random.normal(k_x, (2, 4, 16, 16), dtype=jnp.float32)
    out = nlsq_forward(x, nlsq_params)
    out = jax.block_until_ready(out)
    ref = nlsq_reference(x, nlsq_params)
    assert out.shape == x.shape and out.dtype == x.dtype
    assert jnp.allclose(out, ref, atol=1e-5, rtol=1e-5), "mismatch vs reference (small)"

    # Secondary check: exercises the multi-block (megacore split + ragged) grid path.
    x2 = jax.random.normal(k_x, (5, 8, 64, 128), dtype=jnp.float32)  # 327680 elems, >1 MiB
    out2 = jax.block_until_ready(nlsq_forward(x2, nlsq_params))
    assert jnp.allclose(out2, nlsq_reference(x2, nlsq_params), atol=1e-5, rtol=1e-5), \
        "mismatch vs reference (tiled/ragged)"

    # Tertiary check: exercises the padded-tail path (size not a multiple of 128).
    x3 = jax.random.normal(k_x, (2, 3, 5, 7), dtype=jnp.float32)
    out3 = jax.block_until_ready(nlsq_forward(x3, nlsq_params))
    assert jnp.allclose(out3, nlsq_reference(x3, nlsq_params), atol=1e-5, rtol=1e-5), \
        "mismatch vs reference (ragged tail)"

    print("KERNEL_OK")
</pallas_src>

<mosaic_0001>
module attributes {stable_mosaic.version = 11 : i64} {
  func.func @_nlsq_kernel(%arg0: i32, %arg1: memref<5xf32, #tpu.memory_space<smem>>, %arg2: memref<8x256xf32, #tpu.memory_space<vmem>>, %arg3: memref<8x256xf32, #tpu.memory_space<vmem>>) attributes {dimension_semantics = [#tpu.dimension_semantics<parallel>], iteration_bounds = array<i64: 1>, scalar_prefetch = 1 : i64, scratch_operands = 0 : i64, tpu.core_type = #tpu.core_type<tc>, window_params = [{transform_indices = @transform_0, window_bounds = array<i64: 8, 256>}, {transform_indices = @transform_1, window_bounds = array<i64: 8, 256>}]} {
    %c0 = arith.constant 0 : index
    %0 = memref.load %arg1[%c0] : memref<5xf32, #tpu.memory_space<smem>>
    %c1 = arith.constant 1 : index
    %1 = memref.load %arg1[%c1] : memref<5xf32, #tpu.memory_space<smem>>
    %c2 = arith.constant 2 : index
    %2 = memref.load %arg1[%c2] : memref<5xf32, #tpu.memory_space<smem>>
    %c3 = arith.constant 3 : index
    %3 = memref.load %arg1[%c3] : memref<5xf32, #tpu.memory_space<smem>>
    %c4 = arith.constant 4 : index
    %4 = memref.load %arg1[%c4] : memref<5xf32, #tpu.memory_space<smem>>
    %c0_0 = arith.constant 0 : index
    %c0_1 = arith.constant 0 : index
    %5 = vector.load %arg2[%c0_0, %c0_1] : memref<8x256xf32, #tpu.memory_space<vmem>>, vector<8x256xf32>
    %6 = vector.broadcast %3 : f32 to vector<8x256xf32>
    %7 = arith.mulf %6, %5 : vector<8x256xf32>
    %8 = vector.broadcast %4 : f32 to vector<8x256xf32>
    %9 = arith.addf %7, %8 : vector<8x256xf32>
    %10 = arith.mulf %9, %9 : vector<8x256xf32>
    %cst = arith.constant 1.000000e+00 : f32
    %11 = vector.broadcast %cst : f32 to vector<8x256xf32>
    %12 = arith.addf %11, %10 : vector<8x256xf32>
    %13 = tpu.reciprocal %12 {approx = true} : vector<8x256xf32> -> vector<8x256xf32>
    %14 = arith.mulf %12, %13 : vector<8x256xf32>
    %cst_2 = arith.constant 2.000000e+00 : f32
    %15 = vector.broadcast %cst_2 : f32 to vector<8x256xf32>
    %16 = arith.subf %15, %14 : vector<8x256xf32>
    %17 = arith.mulf %13, %16 : vector<8x256xf32>
    %18 = vector.broadcast %1 : f32 to vector<8x256xf32>
    %19 = arith.mulf %18, %5 : vector<8x256xf32>
    %20 = vector.broadcast %0 : f32 to vector<8x256xf32>
    %21 = arith.addf %20, %19 : vector<8x256xf32>
    %22 = vector.broadcast %2 : f32 to vector<8x256xf32>
    %23 = arith.mulf %22, %17 : vector<8x256xf32>
    %24 = arith.addf %21, %23 : vector<8x256xf32>
    %c0_3 = arith.constant 0 : index
    %c0_4 = arith.constant 0 : index
    %25 = vector.load %arg3[%c0_3, %c0_4] : memref<8x256xf32, #tpu.memory_space<vmem>>, vector<8x256xf32>
    tpu.vector_store %arg3[%c0_3, %c0_4], %24 {strides = array<i32>} : memref<8x256xf32, #tpu.memory_space<vmem>>, vector<8x256xf32>,
    return
  }
  func.func @transform_0(%arg0: i32, %arg1: memref<5xf32, #tpu.memory_space<smem>>) -> (i32, i32) {
    %c0_i32 = arith.constant 0 : i32
    %c0_i32_0 = arith.constant 0 : i32
    return %arg0, %c0_i32 : i32, i32
  }
  func.func @transform_1(%arg0: i32, %arg1: memref<5xf32, #tpu.memory_space<smem>>) -> (i32, i32) {
    %c0_i32 = arith.constant 0 : i32
    %c0_i32_0 = arith.constant 0 : i32
    return %arg0, %c0_i32 : i32, i32
  }
}

</mosaic_0001>

<bundles_post_ra>
// kernel: tpu_custom_call.1
= control target key start
LH: loop header
LB: loop body
LE: loop exit
PB: predicated region body
PF: predicated region fallthrough
CT: control target
= control target key end

     0   :  { %s204_s0 = inlined_call_operand.hbm [shape: f32[5], index: 0, kind: input, shape index: {}]   ;;  %s205_s1 = inlined_call_operand.hbm [shape: f32[8,256], index: 1, kind: input, shape index: {}]   ;;  %s206_s2 = inlined_call_operand.hbm [shape: f32[8,256], index: 2, kind: output, shape index: {}]  }
   0x1   :  { %s90_s11 = scalar_lea.hbm %s204_s0, 16 }
   0x2   :  { %p91_p0 = scmp.ne.s32.totalorder %s204_s0, %s90_s11  ;;  %p94_p1 = scmp.lt.u32.totalorder %s90_s11, %s204_s0 }
   0x4   :  { %p96_p2 = pnand %p94_p1, %p91_p0 }
   0x6   :  { %99 = shalt.err (!%p96_p2)  }
   0x7   :  { %s150_s16 = smov [#allocation3]  }
   0x8   :  { %8 = dma.hbm_to_smem %s204_s0, 16, %s150_s16, [#allocation2] }
   0x9   :  { %144 = dma.done.wait [#allocation2], 16 }
   0xa   :  { %145 = vsyncadd [#allocation2], 4294967280 }
   0xb   :  { %10 = sfence }
   0xc   :  { %11 = vsyncpa [#allocation5], 0 }
   0xd   :  { %12 = vsyncpa [#allocation6], 0  ;;  %s151_s19 = smov [#allocation4]   ;;  %s100_s23 = scalar_lea.hbm %s205_s1, 256 }
   0xe   :  { %s19_s20 = sshll.u32 %s151_s19, 4  ;;  %p101_p3 = scmp.ne.s32.totalorder %s205_s1, %s100_s23  ;;  %s20_s20 = int_to_ptr.vmem [resolvable:$true] %s19_s20 }
   0xf   :  { %p104_p4 = scmp.lt.u32.totalorder %s100_s23, %s205_s1 }
  0x11   :  { %p106_p5 = pnand %p104_p4, %p101_p3 }
  0x13   :  { %109 = shalt.err (!%p106_p5)
}
  0x14   :  { %s110_s0 = scalar_lea.vmem %s20_s20, 256  ;;  %p115_p7 = scmp.lt.s32.totalorder %s20_s20, %s20_s20 }
  0x15   :  { %p111_p6 = scmp.ne.s32.totalorder %s20_s20, %s110_s0  ;;  %p116_p8 = scmp.lt.s32.totalorder %s110_s0, %s110_s0 }
  0x17   :  { %p117_p9 = por %p116_p8, %p115_p7 }
  0x19   :  { %p118_p10 = pnand %p117_p9, %p111_p6 }
  0x1b   :  { %121 = shalt.err (!%p118_p10)
}
  0x1c   :  { %22 = dma.hbm_to_vmem [thread:$0]  %s205_s1, 256, %s20_s20, [#allocation5]  }
  0x1d   :  { %146 = dma.done.wait [#allocation5], 256  }
  0x1e   :  { %147 = vsyncadd [#allocation5], 4294967040  ;;  %s81_s30 = sld [smem:[#allocation3 + $0x3]]  ;;  %s82_s3 = sld [smem:[#allocation3 + $0x4]]  ;;  %v31_v0 = vld [vmem:[#allocation4] sm:$0xff]  ;;  %v32_v1 = vld [vmem:[#allocation4 + $0x8] sm:$0xff] }
  0x1f   :  { %s79_s4 = sld [smem:[#allocation3 + $0x1]]  ;;  %s26_s1 = sld [smem:[#allocation3]] }
  0x20   :  { %s80_s5 = sld [smem:[#allocation3 + $0x2]]  ;;  %s152_s6 = smov [#allocation7]  }
  0x21   :  { %s70_s7 = sshll.u32 %s152_s6, 4  ;;  %s71_s7 = int_to_ptr.vmem [resolvable:$true] %s70_s7 }
  0x22   :  { %s122_s8 = scalar_lea.vmem %s71_s7, 256  ;;  %p127_p12 = scmp.lt.s32.totalorder %s71_s7, %s71_s7 }
  0x23   :  { %p123_p11 = scmp.ne.s32.totalorder %s71_s7, %s122_s8  ;;  %p128_p13 = scmp.lt.s32.totalorder %s122_s8, %s122_s8 }
  0x24   :  { %v33_v2 = vstv %s81_s30  ;;  %v36_v4 = vstv %s82_s3 }
  0x25   :  { %v34_v3 = vmul.f32 %v33_v2, %v31_v0  ;;  %v35_v5 = vmul.f32 %v33_v2, %v32_v1  ;;  %v51_v12 = vstv %s79_s4  ;;  %v54_v17 = vstv %s26_s1  ;;  %p129_p0 = por %p128_p13, %p127_p12 }
  0x26   :  { %v52_v16 = vmul.f32 %v51_v12, %v31_v0  ;;  %v53_v19 = vmul.f32 %v51_v12, %v32_v1  ;;  %v57_v21 = vstv %s80_s5 }
  0x27   :  { %v37_v6 = vadd.f32 %v36_v4, %v34_v3  ;;  %v38_v7 = vadd.f32 %v36_v4, %v35_v5  ;;  %p130_p1 = pnand %p129_p0, %p123_p11 }
  0x28   :  { %v55_v24 = vadd.f32 %v54_v17, %v52_v16  ;;  %v56_v26 = vadd.f32 %v54_v17, %v53_v19 }
  0x29   :  { %v39_v8 = vmul.f32 %v37_v6, %v37_v6  ;;  %v40_v9 = vmul.f32 %v38_v7, %v38_v7 }
  0x2b   :  { %v41_v10 = vadd.f32 1.0, %v39_v8  ;;  %v42_v11 = vadd.f32 1.0, %v40_v9 }
  0x2d   :  { %86 = vrcp.f32 %v41_v10 }
  0x2e   :  { %88 = vrcp.f32 %v42_v11 }
  0x37   :  { %v87_v13 = vpop.eup %86 }
  0x38   :  { %v89_v14 = vpop.eup %88  ;;  %v45_v15 = vmul.f32 %v87_v13, %v41_v10 }
  0x39   :  { %v46_v18 = vmul.f32 %v89_v14, %v42_v11 }
  0x3a   :  { %v47_v20 = vsub.f32 2.0, %v45_v15 }
  0x3b   :  { %v48_v22 = vsub.f32 2.0, %v46_v18 }
  0x3c   :  { %v49_v23 = vmul.f32 %v87_v13, %v47_v20 }
  0x3d   :  { %v50_v25 = vmul.f32 %v89_v14, %v48_v22 }
  0x3e   :  { %v58_v27 = vmul.f32 %v57_v21, %v49_v23 }
  0x3f   :  { %v59_v28 = vmul.f32 %v57_v21, %v50_v25 }
  0x40   :  { %v60_v29 = vadd.f32 %v58_v27, %v55_v24 }
  0x41   :  { %v61_v30 = vadd.f32 %v59_v28, %v56_v26 }
  0x42   :  { %62 = vst [vmem:[#allocation7] sm:$0xff] %v60_v29 }
  0x43   :  { %63 = vst [vmem:[#allocation7 + $0x8] sm:$0xff] %v61_v30 }
  0x44   :  { %133 = shalt.err (!%p130_p1)
}
  0x45   :  { %s134_s11 = scalar_lea.hbm %s206_s2, 256 }
  0x46   :  { %p135_p2 = scmp.ne.s32.totalorder %s206_s2, %s134_s11  ;;  %p138_p3 = scmp.lt.u32.totalorder %s134_s11, %s206_s2 }
  0x48   :  { %p140_p4 = pnand %p138_p3, %p135_p2 }
  0x4a   :  { %143 = shalt.err (!%p140_p4)
}
  0x4b   :  { %73 = dma.vmem_to_hbm [thread:$0]  %s71_s7, 256, %s206_s2, [#allocation6]  }
  0x4c   :  { %148 = dma.done.wait [#allocation6], 256  }
  0x4d   :  { %149 = vsyncadd [#allocation6], 4294967040 }
  0x4e   :  { %77 = vsyncpa [#allocation5], 1 }
  0x4f   :  { %78 = vsyncpa [#allocation6], 1 }

</bundles_post_ra>
